<compile_context>
chip_gen: v6e
topology: v6e:2x2x1
jax: 0.10.0
libtpu: 0.0.40
codegen_flags: <defaults>
</compile_context>

<pallas_src>
import jax
import jax.numpy as jnp
from jax.experimental import pallas as pl
from jax.experimental.pallas import tpu as pltpu

_LANES = 128


def _edge_loss_kernel(p_ref, g_ref, m_ref, out_ref):
    """Fused edge loss for one row tile.

    p_ref, g_ref, m_ref: [TILE_N, M] blocks (pred logits, gt edges, temporal mask).
    out_ref:             [TILE_N, 128] per-row losses in lane 0, zeros elsewhere.

    Per row: loss = neg_w*sum(mask*bce) + pos_w*sum((1-mask)*bce), evaluated for
    bce(pred, gt) + 5*bce(combined, gt), combined = pred*m + gt*(1-m),
    mask = (gt > 0.5), pos_w = num_pos/M, neg_w = (M-num_pos)/M.
    """
    p = p_ref[...].astype(jnp.float32)
    g = g_ref[...].astype(jnp.float32)
    m = m_ref[...].astype(jnp.float32)
    tile_n, row_len = p.shape

    # In-kernel blend (no HBM materialization of `combined`).
    c = p * m + g * (1.0 - m)

    # Threshold mask + per-sample class balancing (C == 1 -> row sums over h*w).
    emask = (g > 0.5).astype(jnp.float32)
    num_pos = jnp.sum(emask, axis=1, keepdims=True)          # [tile_n, 1]
    total = jnp.float32(row_len)                             # full c*h*w
    pos_w = num_pos / total
    neg_w = (total - num_pos) / total

    # Numerically-stable BCE with logits (matches torch's formulation).
    def bce(x, y):
        return jnp.maximum(x, 0.0) - x * y + jnp.log1p(jnp.exp(-jnp.abs(x)))

    # Weights are identical for both terms -> fold the 5x in and reduce once.
    comb = bce(p, g) + 5.0 * bce(c, g)

    s_mask = jnp.sum(emask * comb, axis=1, keepdims=True)    # [tile_n, 1]
    s_rest = jnp.sum(comb, axis=1, keepdims=True) - s_mask
    row_loss = neg_w * s_mask + pos_w * s_rest               # [tile_n, 1]

    lane = jax.lax.broadcasted_iota(jnp.int32, (tile_n, _LANES), 1)
    out_ref[...] = jnp.where(lane == 0, row_loss, 0.0)


def _pick_tile_n(n_rows, row_len, itemsize, vmem_block_budget=2 * 1024 * 1024):
    """Largest multiple-of-8 row tile whose input block stays under the budget."""
    bytes_per_row = max(int(row_len) * int(itemsize), 1)
    t = max(8, (vmem_block_budget // bytes_per_row) // 8 * 8)
    n_pad8 = ((int(n_rows) + 7) // 8) * 8
    return int(min(t, n_pad8))


def _edge_loss_partials(p_all, g_all, m_all, tile_n):
    """Pallas call: [N, M] x3 -> [N, 128] per-row (lane-0) partial losses."""
    n, row_len = p_all.shape
    num_tiles = n // tile_n
    itemsize = jnp.dtype(p_all.dtype).itemsize
    cost = pl.CostEstimate(
        flops=20 * n * row_len,
        transcendentals=4 * n * row_len,
        bytes_accessed=3 * n * row_len * itemsize + n * _LANES * 4,
    )
    row_spec = pl.BlockSpec((tile_n, row_len), lambda i: (i, 0))
    return pl.pallas_call(
        _edge_loss_kernel,
        out_shape=jax.ShapeDtypeStruct((n, _LANES), jnp.float32),
        grid=(num_tiles,),
        in_specs=[row_spec, row_spec, row_spec],
        out_specs=pl.BlockSpec((tile_n, _LANES), lambda i: (i, 0)),
        compiler_params=pltpu.CompilerParams(
            dimension_semantics=("parallel",),
            vmem_limit_bytes=32 * 1024 * 1024,
        ),
        cost_estimate=cost,
    )(p_all, g_all, m_all)


def edge_loss_forward(pred_edges, gt_edges, masks, tile_n=None):
    """Mirrors EdgeLoss.forward(pred_edges, gt_edges, masks).

    pred_edges, gt_edges: lists (len 2) of [B, T-1, H, W] arrays.
    masks: [B, T, H, W] array.
    """
    h, w = pred_edges[0].shape[-2], pred_edges[0].shape[-1]
    row_len = h * w
    masks_list = [masks[:, :-1, ...], masks[:, 1:, ...]]

    # rows per edge map = b*(t-1); each edgeLoss() mean divides by this * h*w.
    n_per_map = 1
    for d in pred_edges[0].shape[:-2]:
        n_per_map *= int(d)

    # Stack both edge maps along the row axis -> one fused kernel launch.
    # (reshape/concat is layout glue; no dtype up-casts in the wrapper.)
    p_all = jnp.concatenate([p.reshape(-1, row_len) for p in pred_edges], axis=0)
    g_all = jnp.concatenate([g.reshape(-1, row_len) for g in gt_edges], axis=0)
    m_all = jnp.concatenate([mk.reshape(-1, row_len) for mk in masks_list], axis=0)

    n_total = p_all.shape[0]
    if tile_n is None:
        tile_n = _pick_tile_n(n_total, row_len, jnp.dtype(p_all.dtype).itemsize)
    padded_n = ((n_total + tile_n - 1) // tile_n) * tile_n
    if padded_n != n_total:
        pad = padded_n - n_total
        # Zero rows contribute exactly 0: mask==0 -> s_mask==0 and pos_w==0.
        p_all = jnp.pad(p_all, ((0, pad), (0, 0)))
        g_all = jnp.pad(g_all, ((0, pad), (0, 0)))
        m_all = jnp.pad(m_all, ((0, pad), (0, 0)))

    partials = _edge_loss_partials(p_all, g_all, m_all, tile_n)
    # loss = sum_maps [ mean(wbce_p) + 5*mean(wbce_c) ]; both maps share the
    # same per-map denominator n_per_map*row_len, so one global sum suffices.
    return jnp.sum(partials) / jnp.float32(n_per_map * row_len)


# ---------------- pure-JAX reference (mirrors the PyTorch spec) ----------------
def _edge_loss_ref(preds, edges):
    x = preds.astype(jnp.float32)
    y = edges.astype(jnp.float32)
    mask = (y > 0.5).astype(jnp.float32)
    n, m = x.shape
    num_pos = jnp.sum(mask, axis=1, keepdims=True)
    total = jnp.float32(m)
    weight = ((total - num_pos) / total) * mask + (num_pos / total) * (1.0 - mask)
    bce = jnp.maximum(x, 0.0) - x * y + jnp.log1p(jnp.exp(-jnp.abs(x)))
    return jnp.sum(weight * bce) / jnp.float32(n * m)


def _forward_ref(pred_edges, gt_edges, masks):
    h, w = pred_edges[0].shape[-2], pred_edges[0].shape[-1]
    masks_list = [masks[:, :-1, ...], masks[:, 1:, ...]]
    loss = jnp.float32(0.0)
    for i in range(len(pred_edges)):
        m = masks_list[i].astype(jnp.float32)
        p = pred_edges[i].astype(jnp.float32)
        g = gt_edges[i].astype(jnp.float32)
        combined = p * m + g * (1.0 - m)
        loss = (loss
                + _edge_loss_ref(p.reshape(-1, h * w), g.reshape(-1, h * w))
                + 5.0 * _edge_loss_ref(combined.reshape(-1, h * w),
                                       g.reshape(-1, h * w)))
    return loss


if __name__ == "__main__":
    key = jax.random.PRNGKey(0)
    B, T, H, W = 2, 4, 16, 16          # masks [B,T,H,W]; each edge map [B,T-1,H,W]
    k = jax.random.split(key, 5)

    pred_edges = [
        jax.random.normal(k[0], (B, T - 1, H, W), jnp.float32),   # logits
        jax.random.normal(k[1], (B, T - 1, H, W), jnp.float32),
    ]
    gt_edges = [
        (jax.random.uniform(k[2], (B, T - 1, H, W)) > 0.8).astype(jnp.float32),
        (jax.random.uniform(k[3], (B, T - 1, H, W)) > 0.8).astype(jnp.float32),
    ]
    masks = (jax.random.uniform(k[4], (B, T, H, W)) > 0.5).astype(jnp.float32)

    ref = jax.block_until_ready(_forward_ref(pred_edges, gt_edges, masks))

    # Default tile (single tile at this size; rows padded 12 -> 16).
    loss = jax.block_until_ready(edge_loss_forward(pred_edges, gt_edges, masks))
    assert jnp.allclose(loss, ref, rtol=1e-5, atol=1e-5), (loss, ref)

    # Small forced tile to exercise the multi-tile "parallel" grid + padding path.
    loss_tiled = jax.block_until_ready(
        edge_loss_forward(pred_edges, gt_edges, masks, tile_n=8))
    assert jnp.allclose(loss_tiled, ref, rtol=1e-5, atol=1e-5), (loss_tiled, ref)

    print("KERNEL_OK")
</pallas_src>

<mosaic_0001>
module attributes {stable_mosaic.version = 11 : i64} {
  func.func @_edge_loss_kernel(%arg0: i32, %arg1: memref<16x256xf32, #tpu.memory_space<vmem>>, %arg2: memref<16x256xf32, #tpu.memory_space<vmem>>, %arg3: memref<16x256xf32, #tpu.memory_space<vmem>>, %arg4: memref<16x128xf32, #tpu.memory_space<vmem>>) attributes {dimension_semantics = [#tpu.dimension_semantics<parallel>], iteration_bounds = array<i64: 1>, scalar_prefetch = 0 : i64, scratch_operands = 0 : i64, tpu.core_type = #tpu.core_type<tc>, window_params = [{transform_indices = @transform_0, window_bounds = array<i64: 16, 256>}, {transform_indices = @transform_1, window_bounds = array<i64: 16, 256>}, {transform_indices = @transform_2, window_bounds = array<i64: 16, 256>}, {transform_indices = @transform_3, window_bounds = array<i64: 16, 128>}]} {
    %c0 = arith.constant 0 : index
    %c0_0 = arith.constant 0 : index
    %0 = vector.load %arg1[%c0, %c0_0] : memref<16x256xf32, #tpu.memory_space<vmem>>, vector<16x256xf32>
    %c0_1 = arith.constant 0 : index
    %c0_2 = arith.constant 0 : index
    %1 = vector.load %arg2[%c0_1, %c0_2] : memref<16x256xf32, #tpu.memory_space<vmem>>, vector<16x256xf32>
    %c0_3 = arith.constant 0 : index
    %c0_4 = arith.constant 0 : index
    %2 = vector.load %arg3[%c0_3, %c0_4] : memref<16x256xf32, #tpu.memory_space<vmem>>, vector<16x256xf32>
    %3 = arith.mulf %0, %2 : vector<16x256xf32>
    %cst = arith.constant 1.000000e+00 : f32
    %4 = vector.broadcast %cst : f32 to vector<16x256xf32>
    %5 = arith.subf %4, %2 : vector<16x256xf32>
    %6 = arith.mulf %1, %5 : vector<16x256xf32>
    %7 = arith.addf %3, %6 : vector<16x256xf32>
    %cst_5 = arith.constant 5.000000e-01 : f32
    %8 = vector.broadcast %cst_5 : f32 to vector<16x256xf32>
    %9 = arith.cmpf ogt, %1, %8 : vector<16x256xf32>
    %10 = arith.extui %9 : vector<16x256xi1> to vector<16x256xi32>
    %11 = arith.sitofp %10 : vector<16x256xi32> to vector<16x256xf32>
    %cst_6 = arith.constant dense<0.000000e+00> : vector<16xf32>
    %12 = vector.multi_reduction <add>, %11, %cst_6 [1] : vector<16x256xf32> to vector<16xf32>
    %13 = vector.shape_cast %12 : vector<16xf32> to vector<16x1xf32>
    %cst_7 = arith.constant 2.560000e+02 : f32
    %14 = vector.broadcast %cst_7 : f32 to vector<16x1xf32>
    %15 = arith.divf %13, %14 : vector<16x1xf32>
    %cst_8 = arith.constant 2.560000e+02 : f32
    %16 = vector.broadcast %cst_8 : f32 to vector<16x1xf32>
    %17 = arith.subf %16, %13 : vector<16x1xf32>
    %cst_9 = arith.constant 2.560000e+02 : f32
    %18 = vector.broadcast %cst_9 : f32 to vector<16x1xf32>
    %19 = arith.divf %17, %18 : vector<16x1xf32>
    %cst_10 = arith.constant 0.000000e+00 : f32
    %20 = vector.broadcast %cst_10 : f32 to vector<16x256xf32>
    %21 = arith.maximumf %0, %20 : vector<16x256xf32>
    %22 = arith.mulf %0, %1 : vector<16x256xf32>
    %23 = arith.subf %21, %22 : vector<16x256xf32>
    %24 = math.absf %0 : vector<16x256xf32>
    %cst_11 = arith.constant 0.000000e+00 : f32
    %25 = vector.broadcast %cst_11 : f32 to vector<16x256xf32>
    %26 = arith.subf %25, %24 : vector<16x256xf32>
    %27 = math.exp %26 : vector<16x256xf32>
    %28 = math.log1p %27 : vector<16x256xf32>
    %29 = arith.addf %23, %28 : vector<16x256xf32>
    %cst_12 = arith.constant 0.000000e+00 : f32
    %30 = vector.broadcast %cst_12 : f32 to vector<16x256xf32>
    %31 = arith.maximumf %7, %30 : vector<16x256xf32>
    %32 = arith.mulf %7, %1 : vector<16x256xf32>
    %33 = arith.subf %31, %32 : vector<16x256xf32>
    %34 = math.absf %7 : vector<16x256xf32>
    %cst_13 = arith.constant 0.000000e+00 : f32
    %35 = vector.broadcast %cst_13 : f32 to vector<16x256xf32>
    %36 = arith.subf %35, %34 : vector<16x256xf32>
    %37 = math.exp %36 : vector<16x256xf32>
    %38 = math.log1p %37 : vector<16x256xf32>
    %39 = arith.addf %33, %38 : vector<16x256xf32>
    %cst_14 = arith.constant 5.000000e+00 : f32
    %40 = vector.broadcast %cst_14 : f32 to vector<16x256xf32>
    %41 = arith.mulf %40, %39 : vector<16x256xf32>
    %42 = arith.addf %29, %41 : vector<16x256xf32>
    %43 = arith.mulf %11, %42 : vector<16x256xf32>
    %cst_15 = arith.constant dense<0.000000e+00> : vector<16xf32>
    %44 = vector.multi_reduction <add>, %43, %cst_15 [1] : vector<16x256xf32> to vector<16xf32>
    %45 = vector.shape_cast %44 : vector<16xf32> to vector<16x1xf32>
    %cst_16 = arith.constant dense<0.000000e+00> : vector<16xf32>
    %46 = vector.multi_reduction <add>, %42, %cst_16 [1] : vector<16x256xf32> to vector<16xf32>
    %47 = vector.shape_cast %46 : vector<16xf32> to vector<16x1xf32>
    %48 = arith.subf %47, %45 : vector<16x1xf32>
    %49 = arith.mulf %19, %45 : vector<16x1xf32>
    %50 = arith.mulf %15, %48 : vector<16x1xf32>
    %51 = arith.addf %49, %50 : vector<16x1xf32>
    %52 = tpu.iota {dimensions = array<i32: 1>} : vector<16x128xi32>
    %c0_i32 = arith.constant 0 : i32
    %53 = vector.broadcast %c0_i32 : i32 to vector<16x128xi32>
    %54 = arith.cmpi eq, %52, %53 : vector<16x128xi32>
    %cst_17 = arith.constant 0.000000e+00 : f32
    %55 = vector.shape_cast %51 : vector<16x1xf32> to vector<16x1xf32>
    %56 = vector.broadcast %55 : vector<16x1xf32> to vector<16x128xf32>
    %57 = vector.broadcast %cst_17 : f32 to vector<16x128xf32>
    %58 = arith.select %54, %56, %57 : vector<16x128xi1>, vector<16x128xf32>
    %c0_18 = arith.constant 0 : index
    %c0_19 = arith.constant 0 : index
    %59 = vector.load %arg4[%c0_18, %c0_19] : memref<16x128xf32, #tpu.memory_space<vmem>>, vector<16x128xf32>
    tpu.vector_store %arg4[%c0_18, %c0_19], %58 {strides = array<i32>} : memref<16x128xf32, #tpu.memory_space<vmem>>, vector<16x128xf32>,
    return
  }
  func.func @transform_0(%arg0: i32) -> (i32, i32) {
    %c0_i32 = arith.constant 0 : i32
    %c0_i32_0 = arith.constant 0 : i32
    return %arg0, %c0_i32 : i32, i32
  }
  func.func @transform_1(%arg0: i32) -> (i32, i32) {
    %c0_i32 = arith.constant 0 : i32
    %c0_i32_0 = arith.constant 0 : i32
    return %arg0, %c0_i32 : i32, i32
  }
  func.func @transform_2(%arg0: i32) -> (i32, i32) {
    %c0_i32 = arith.constant 0 : i32
    %c0_i32_0 = arith.constant 0 : i32
    return %arg0, %c0_i32 : i32, i32
  }
  func.func @transform_3(%arg0: i32) -> (i32, i32) {
    %c0_i32 = arith.constant 0 : i32
    %c0_i32_0 = arith.constant 0 : i32
    return %arg0, %c0_i32 : i32, i32
  }
}

</mosaic_0001>

<bundles_post_ra>
// kernel: tpu_custom_call.1
= control target key start
LH: loop header
LB: loop body
LE: loop exit
PB: predicated region body
PF: predicated region fallthrough
CT: control target
= control target key end

     0   :  { %8 = vsyncpa [#allocation3], 0  ;;  %s669_s0 = inlined_call_operand.hbm [shape: f32[16,256], index: 0, kind: input, shape index: {}]   ;;  %s670_s1 = inlined_call_operand.hbm [shape: f32[16,256], index: 1, kind: input, shape index: {}]   ;;  %s671_s2 = inlined_call_operand.hbm [shape: f32[16,256], index: 2, kind: input, shape index: {}]   ;;  %s672_s3 = inlined_call_operand.hbm [shape: f32[16,128], index: 3, kind: output, shape index: {}]  }
   0x1   :  { %9 = vsyncpa [#allocation6], 0 }
   0x2   :  { %10 = vsyncpa [#allocation4], 0  ;;  %s433_s12 = smov [#allocation5]   ;;  %s434_s14 = smov [#allocation2]  }
   0x3   :  { %s28_s13 = sshll.u32 %s433_s12, 4  ;;  %s16_s15 = sshll.u32 %s434_s14, 4  ;;  %s29_s13 = int_to_ptr.vmem [resolvable:$true] %s28_s13  ;;  %s17_s15 = int_to_ptr.vmem [resolvable:$true] %s16_s15 }
   0x4   :  { %s355_s16 = scalar_lea.vmem %s29_s13, 512  ;;  %p360_p1 = scmp.lt.s32.totalorder %s29_s13, %s29_s13 }
   0x5   :  { %p356_p0 = scmp.ne.s32.totalorder %s29_s13, %s355_s16  ;;  %p361_p2 = scmp.lt.s32.totalorder %s355_s16, %s355_s16 }
   0x7   :  { %p362_p3 = por %p361_p2, %p360_p1 }
   0x9   :  { %p363_p4 = pnand %p362_p3, %p356_p0 }
   0xb   :  { %366 = shalt.err (!%p363_p4)
}
   0xc   :  { %s435_s17 = smov 256   ;;  %s436_s18 = smov 16  }
   0xd   :  { %34 = dma.hbm_to_vmem [thread:$0]  %s670_s1, 512, %s29_s13, [#allocation6], %s435_s17, %s435_s17, %s436_s18  }
   0xe   :  { %s375_s21 = scalar_lea.vmem %s17_s15, 512  ;;  %p380_p6 = scmp.lt.s32.totalorder %s17_s15, %s17_s15 }
   0xf   :  { %p376_p5 = scmp.ne.s32.totalorder %s17_s15, %s375_s21  ;;  %p381_p7 = scmp.lt.s32.totalorder %s375_s21, %s375_s21 }
  0x11   :  { %p382_p8 = por %p381_p7, %p380_p6 }
  0x13   :  { %p383_p9 = pnand %p382_p8, %p376_p5 }
  0x15   :  { %386 = shalt.err (!%p383_p9)
}
  0x16   :  { %22 = dma.hbm_to_vmem [thread:$0]  %s669_s0, 512, %s17_s15, [#allocation3], %s435_s17, %s435_s17, %s436_s18  }
  0x17   :  { %s437_s24 = smov [#allocation7]  }
  0x18   :  { %s40_s25 = sshll.u32 %s437_s24, 4  ;;  %s41_s25 = int_to_ptr.vmem [resolvable:$true] %s40_s25 }
  0x19   :  { %s395_s26 = scalar_lea.vmem %s41_s25, 512  ;;  %p400_p11 = scmp.lt.s32.totalorder %s41_s25, %s41_s25 }
  0x1a   :  { %p396_p10 = scmp.ne.s32.totalorder %s41_s25, %s395_s26  ;;  %p401_p12 = scmp.lt.s32.totalorder %s395_s26, %s395_s26 }
  0x1c   :  { %p402_p13 = por %p401_p12, %p400_p11 }
  0x1e   :  { %p403_p0 = pnand %p402_p13, %p396_p10 }
  0x20   :  { %406 = shalt.err (!%p403_p0)
}
  0x21   :  { %46 = dma.hbm_to_vmem [thread:$0]  %s671_s2, 512, %s41_s25, [#allocation6], %s435_s17, %s435_s17, %s436_s18  }
  0x22   :  { %427 = dma.done.wait [#allocation3], 512  }
  0x23   :  { %428 = vsyncadd [#allocation3], 4294966784 }
  0x24   :  { %429 = dma.done.wait [#allocation6], 1024  }
  0x25   :  { %430 = vsyncadd [#allocation6], 4294966272  ;;  %v471_v0 = vld [vmem:[#allocation5] sm:$0xff]  ;;  %v473_v1 = vld [vmem:[#allocation5 + $0x8] sm:$0xff]  ;;  %v438_v8 = vmov 0.0   ;;  %s439_s0 = smov [#allocation8]  }
  0x26   :  { %v64_v2 = vld [vmem:[#allocation7] sm:$0xff]  ;;  %v65_v3 = vld [vmem:[#allocation7 + $0x8] sm:$0xff]  ;;  %vm84_vm0 = vcmp.gt.f32.partialorder %v471_v0, 0.5  ;;  %vm85_vm1 = vcmp.gt.f32.partialorder %v473_v1, 0.5  ;;  %v66_v12 = vld [vmem:[#allocation7 + $0x10] sm:$0xff]  ;;  %s289_s2 = sshll.u32 %s439_s0, 4  ;;  %s290_s2 = int_to_ptr.vmem [resolvable:$true] %s289_s2 }
  0x27   :  { %v72_v4 = vsub.f32 1.0, %v64_v2  ;;  %v477_v5 = vld [vmem:[#allocation2] sm:$0xff]  ;;  %v479_v6 = vld [vmem:[#allocation2 + $0x8] sm:$0xff]  ;;  %v73_v7 = vsub.f32 1.0, %v65_v3  ;;  %v481_v9 = vsel %vm84_vm0, 1.0, %v438_v8  ;;  %v483_v10 = vsel %vm85_vm1, 1.0, %v438_v8  ;;  %p412_p2 = scmp.lt.s32.totalorder %s290_s2, %s290_s2 }
  0x28   :  { %v68_v11 = vmul.f32 %v64_v2, %v477_v5  ;;  %v96_v13 = vadd.f32 %v483_v10, %v481_v9  ;;  %v69_v14 = vmul.f32 %v65_v3, %v479_v6  ;;  %v121_v16 = vand.u32 2147483647, %v477_v5  ;;  %v491_v17 = vld [vmem:[#allocation5 + $0x10] sm:$0xff]  ;;  %v493_v18 = vld [vmem:[#allocation5 + $0x18] sm:$0xff]  ;;  %s407_s28 = scalar_lea.vmem %s290_s2, 256 }
  0x29   :  { %v76_v15 = vmul.f32 %v72_v4, %v471_v0  ;;  %v67_v19 = vld [vmem:[#allocation7 + $0x18] sm:$0xff]  ;;  %v77_v20 = vmul.f32 %v73_v7, %v473_v1  ;;  %v122_v21 = vand.u32 2147483647, %v479_v6  ;;  %v74_v22 = vsub.f32 1.0, %v66_v12  ;;  %v501_v26 = vld [vmem:[#allocation2 + $0x10] sm:$0xff]  ;;  %p408_p1 = scmp.ne.s32.totalorder %s290_s2, %s407_s28  ;;  %p413_p3 = scmp.lt.s32.totalorder %s407_s28, %s407_s28 }
  0x2a   :  { %v75_v23 = vsub.f32 1.0, %v67_v19  ;;  %97 = vadd.xlane.f32.xlu0 %v96_v13  ;;  %v125_v25 = vsub.f32 0.0, %v121_v16  ;;  %vm86_vm2 = vcmp.gt.f32.partialorder %v491_v17, 0.5  ;;  %vm87_vm3 = vcmp.gt.f32.partialorder %v493_v18, 0.5  ;;  %v507_v31 = vld [vmem:[#allocation2 + $0x18] sm:$0xff] }
  0x2b   :  { %v497_v24 = vadd.f32 %v76_v15, %v68_v11  ;;  %v503_v27 = vadd.f32 %v77_v20, %v69_v14  ;;  %v126_v28 = vsub.f32 0.0, %v122_v21  ;;  %v78_v29 = vmul.f32 %v74_v22, %v491_v17  ;;  %p414_p4 = por %p413_p3, %p412_p2 }
  0x2c   :  { %v79_v30 = vmul.f32 %v75_v23, %v493_v18  ;;  %v129_v32 = vmul.f32 1.442695, %v125_v25  ;;  %v510_v34 = vsel %vm86_vm2, 1.0, %v438_v8  ;;  %v512_v35 = vsel %vm87_vm3, 1.0, %v438_v8 }
  0x2d   :  { %v189_v33 = vand.u32 2147483647, %v497_v24  ;;  %v131_v36 = vmul.f32 1.442695, %v126_v28  ;;  %v190_v37 = vand.u32 2147483647, %v503_v27  ;;  %v99_v38 = vadd.f32 %v512_v35, %v510_v34  ;;  %p415_p5 = pnand %p414_p4, %p408_p1 }
  0x2e   :  { %v70_v39 = vmul.f32 %v66_v12, %v501_v26  ;;  %315 = vpow2.f32 %v129_v32  ;;  %v71_v41 = vmul.f32 %v67_v19, %v507_v31  ;;  %v123_v42 = vand.u32 2147483647, %v501_v26 }
  0x2f   :  { %v193_v40 = vsub.f32 0.0, %v189_v33  ;;  %317 = vpow2.f32 %v131_v36  ;;  %v194_v43 = vsub.f32 0.0, %v190_v37  ;;  %100 = vadd.xlane.f32.xlu0 %v99_v38  ;;  %v124_v45 = vand.u32 2147483647, %v507_v31 }
  0x30   :  { %v520_v44 = vadd.f32 %v78_v29, %v70_v39  ;;  %v523_v47 = vadd.f32 %v79_v30, %v71_v41  ;;  %v127_v48 = vsub.f32 0.0, %v123_v42  ;;  %v109_v3 = vmax.f32 %v477_v5, 0.0 }
  0x31   :  { %v197_v46 = vmul.f32 1.442695, %v193_v40  ;;  %v199_v49 = vmul.f32 1.442695, %v194_v43  ;;  %v128_v50 = vsub.f32 0.0, %v124_v45  ;;  %v113_v4 = vmul.f32 %v471_v0, %v477_v5 }
  0x32   :  { %v191_v51 = vand.u32 2147483647, %v520_v44  ;;  %v133_v52 = vmul.f32 1.442695, %v127_v48  ;;  %v192_v53 = vand.u32 2147483647, %v523_v47  ;;  %v545_v11 = vmul.f32 %v520_v44, %v491_v17 }
  0x33   :  { %319 = vpow2.f32 %v197_v46  ;;  %v135_v54 = vmul.f32 1.442695, %v128_v50  ;;  %v110_v12 = vmax.f32 %v479_v6, 0.0  ;;  %v114_v13 = vmul.f32 %v473_v1, %v479_v6 }
  0x34   :  { %321 = vpow2.f32 %v199_v49  ;;  %v195_v55 = vsub.f32 0.0, %v191_v51  ;;  %v196_v56 = vsub.f32 0.0, %v192_v53  ;;  %v177_v16 = vmax.f32 %v497_v24, 0.0 }
  0x35   :  { %323 = vpow2.f32 %v133_v52  ;;  %v181_v5 = vmul.f32 %v497_v24, %v471_v0  ;;  %v559_v20 = vmul.f32 %v523_v47, %v493_v18  ;;  %v178_v21 = vmax.f32 %v503_v27, 0.0 }
  0x36   :  { %325 = vpow2.f32 %v135_v54  ;;  %v201_v57 = vmul.f32 1.442695, %v195_v55  ;;  %v203_v58 = vmul.f32 1.442695, %v196_v56  ;;  %v182_v6 = vmul.f32 %v503_v27, %v473_v1 }
  0x37   :  { %v566_v23 = vsub.f32 %v109_v3, %v113_v4  ;;  %v572_v28 = vsub.f32 %v110_v12, %v114_v13  ;;  %v111_v30 = vmax.f32 %v501_v26, 0.0  ;;  %v112_v1 = vmax.f32 %v507_v31, 0.0 }
  0x38   :  { %327 = vpow2.f32 %v201_v57  ;;  %v185_v27 = vsub.f32 %v177_v16, %v181_v5  ;;  %v186_v36 = vsub.f32 %v178_v21, %v182_v6  ;;  %v115_v38 = vmul.f32 %v491_v17, %v501_v26 }
  0x39   :  { %329 = vpow2.f32 %v203_v58  ;;  %v584_v39 = vmul.f32 %v493_v18, %v507_v31  ;;  %v179_v41 = vmax.f32 %v520_v44, 0.0  ;;  %v180_v48 = vmax.f32 %v523_v47, 0.0 }
  0x3a   :  { %v119_v52 = vsub.f32 %v111_v30, %v115_v38  ;;  %v277_v5 = vlaneseq }
  0x3b   :  { %v527_v59 = vpop.eup %315 }
  0x3c   :  { %v529_v60 = vpop.eup %317  ;;  %v137_v61 = vadd.f32 1.0, %v527_v59  ;;  %v140_v25 = vmul.f32 -0.5, %v527_v59  ;;  %v143_v43 = vand.u32 2147483647, %v527_v59 }
  0x3d   :  { %v146_v62 = vadd.f32 1.0, %v529_v60  ;;  %v149_v29 = vmul.f32 -0.5, %v529_v60  ;;  %v152_v49 = vand.u32 2147483647, %v529_v60 }
  0x3e   :  { %331 = vlog2.f32 %v137_v61  ;;  %v141_v40 = vadd.f32 1.0, %v140_v25  ;;  %vm598_vm4 = vcmp.lt.f32.partialorder %v143_v43, 0.0004427343 }
  0x3f   :  { %333 = vlog2.f32 %v146_v62  ;;  %v150_v45 = vadd.f32 1.0, %v149_v29  ;;  %vm603_vm5 = vcmp.lt.f32.partialorder %v152_v49, 0.0004427343 }
  0x40   :  { %v533_v63 = vpop.eup %319  ;;  %v142_v55 = vmul.f32 %v527_v59, %v141_v40 }
  0x41   :  { %v535_v2 = vpop.eup %321  ;;  %v205_v7 = vadd.f32 1.0, %v533_v63  ;;  %v208_v32 = vmul.f32 -0.5, %v533_v63  ;;  %v211_v50 = vand.u32 2147483647, %v533_v63  ;;  %v151_v62 = vmul.f32 %v529_v60, %v150_v45 }
  0x42   :  { %v541_v8 = vpop.eup %323  ;;  %v214_v14 = vadd.f32 1.0, %v535_v2  ;;  %v217_v37 = vmul.f32 -0.5, %v535_v2  ;;  %v220_v51 = vand.u32 2147483647, %v535_v2 }
  0x43   :  { %v551_v15 = vpop.eup %325  ;;  %335 = vlog2.f32 %v205_v7  ;;  %v155_v19 = vadd.f32 1.0, %v541_v8  ;;  %v158_v46 = vmul.f32 -0.5, %v541_v8  ;;  %v209_v17 = vadd.f32 1.0, %v208_v32 }
  0x44   :  { %337 = vlog2.f32 %v214_v14  ;;  %v164_v0 = vadd.f32 1.0, %v551_v15  ;;  %v167_v26 = vmul.f32 -0.5, %v551_v15  ;;  %v218_v44 = vadd.f32 1.0, %v217_v37 }
  0x45   :  { %v564_v22 = vpop.eup %327  ;;  %339 = vlog2.f32 %v155_v19  ;;  %v161_v56 = vand.u32 2147483647, %v541_v8  ;;  %v159_v3 = vadd.f32 1.0, %v158_v46  ;;  %v210_v7 = vmul.f32 %v533_v63, %v209_v17 }
  0x46   :  { %v570_v24 = vpop.eup %329  ;;  %341 = vlog2.f32 %v164_v0  ;;  %v223_v33 = vadd.f32 1.0, %v564_v22  ;;  %v226_v57 = vmul.f32 -0.5, %v564_v22  ;;  %v168_v12 = vadd.f32 1.0, %v167_v26 }
  0x47   :  { %v232_v42 = vadd.f32 1.0, %v570_v24  ;;  %v235_v59 = vmul.f32 -0.5, %v570_v24  ;;  %vm609_vm6 = vcmp.lt.f32.partialorder %v211_v50, 0.0004427343  ;;  %v219_v16 = vmul.f32 %v535_v2, %v218_v44 }
  0x48   :  { %343 = vlog2.f32 %v223_v33  ;;  %vm614_vm7 = vcmp.lt.f32.partialorder %v220_v51, 0.0004427343  ;;  %v170_v60 = vand.u32 2147483647, %v551_v15  ;;  %vm621_vm8 = vcmp.lt.f32.partialorder %v161_v56, 0.0004427343 }
  0x49   :  { %345 = vlog2.f32 %v232_v42  ;;  %v227_v25 = vadd.f32 1.0, %v226_v57  ;;  %v160_v30 = vmul.f32 %v541_v8, %v159_v3  ;;  %v229_v32 = vand.u32 2147483647, %v564_v22 }
  0x4a   :  { %v169_v38 = vmul.f32 %v551_v15, %v168_v12  ;;  %v236_v40 = vadd.f32 1.0, %v235_v59  ;;  %v238_v49 = vand.u32 2147483647, %v570_v24  ;;  %vm638_vm9 = vcmp.lt.f32.partialorder %v170_v60, 0.0004427343 }
  0x4b   :  { %v332_v18 = vpop.eup %331  ;;  %vm643_vm10 = vcmp.lt.f32.partialorder %v229_v32, 0.0004427343 }
  0x4c   :  { %v334_v53 = vpop.eup %333  ;;  %v139_v54 = vmul.f32 0.6931472, %v332_v18  ;;  %v228_v18 = vmul.f32 %v564_v22, %v227_v25  ;;  %vm239_vm11 = vcmp.lt.f32.partialorder %v238_v49, 0.0004427343 }
  0x4d   :  { %v148_v61 = vmul.f32 0.6931472, %v334_v53  ;;  %v237_v53 = vmul.f32 %v570_v24, %v236_v40 }
  0x4e   :  { %v145_v63 = vsel %vm598_vm4, %v142_v55, %v139_v54  ;;  %v120_v55 = vsub.f32 %v112_v1, %v584_v39 }
  0x4f   :  { %v154_v2 = vsel %vm603_vm5, %v151_v62, %v148_v61  ;;  %v173_v43 = vadd.f32 %v145_v63, %v566_v23  ;;  %v187_v23 = vsub.f32 %v179_v41, %v545_v11  ;;  %v188_v11 = vsub.f32 %v180_v48, %v559_v20 }
  0x50   :  { %v336_v13 = vpop.eup %335  ;;  %v174_v8 = vadd.f32 %v154_v2, %v572_v28 }
  0x51   :  { %v338_v19 = vpop.eup %337  ;;  %v207_v21 = vmul.f32 0.6931472, %v336_v13 }
  0x52   :  { %v340_v0 = vpop.eup %339  ;;  %v216_v29 = vmul.f32 0.6931472, %v338_v19 }
  0x53   :  { %v213_v33 = vsel %vm609_vm6, %v210_v7, %v207_v21  ;;  %v157_v37 = vmul.f32 0.6931472, %v340_v0  ;;  %v342_v42 = vpop.eup %341  ;;  %v278_v21 = vand.u32 127, %v277_v5 }
  0x54   :  { %v222_v45 = vsel %vm614_vm7, %v219_v16, %v216_v29  ;;  %v241_v46 = vadd.f32 %v213_v33, %v185_v27  ;;  %v166_v26 = vmul.f32 0.6931472, %v342_v42 }
  0x55   :  { %v242_v17 = vadd.f32 %v222_v45, %v186_v36  ;;  %v344_v50 = vpop.eup %343  ;;  %v163_v28 = vsel %vm621_vm8, %v160_v30, %v157_v37  ;;  %vm279_vm12 = vcmp.eq.s32.totalorder %v278_v21, 0 }
  0x56   :  { %v245_v44 = vmul.f32 5.0, %v241_v46  ;;  %v225_v36 = vmul.f32 0.6931472, %v344_v50  ;;  %v346_v22 = vpop.eup %345  ;;  %v172_v56 = vsel %vm638_vm9, %v169_v38, %v166_v26  ;;  %v175_v61 = vadd.f32 %v163_v28, %v119_v52 }
  0x57   :  { %v246_v27 = vmul.f32 5.0, %v242_v17  ;;  %v234_v58 = vmul.f32 0.6931472, %v346_v22  ;;  %v176_v39 = vadd.f32 %v172_v56, %v120_v55 }
  0x58   :  { %v249_v54 = vadd.f32 %v245_v44, %v173_v43  ;;  %v231_v57 = vsel %vm643_vm10, %v228_v18, %v225_v36 }
  0x59   :  { %v250_v41 = vadd.f32 %v246_v27, %v174_v8  ;;  %v243_v62 = vadd.f32 %v231_v57, %v187_v23  ;;  %v240_v1 = vsel %vm239_vm11, %v237_v53, %v234_v58 }
  0x5a   :  { %v253_v24 = vmul.f32 %v481_v9, %v249_v54  ;;  %v244_v47 = vadd.f32 %v240_v1, %v188_v11 }
  0x5b   :  { %v263_v3 = vadd.f32 %v250_v41, %v249_v54  ;;  %v254_v31 = vmul.f32 %v483_v10, %v250_v41  ;;  %v247_v20 = vmul.f32 5.0, %v243_v62 }
  0x5c   :  { %v248_v4 = vmul.f32 5.0, %v244_v47 }
  0x5d   :  { %264 = vadd.xlane.f32.xlu0 %v263_v3  ;;  %v257_v48 = vadd.f32 %v254_v31, %v253_v24  ;;  %v251_v7 = vadd.f32 %v247_v20, %v175_v61 }
  0x5e   :  { %v252_v12 = vadd.f32 %v248_v4, %v176_v39 }
  0x5f   :  { %258 = vadd.xlane.f32.xlu1 %v257_v48  ;;  %v255_v59 = vmul.f32 %v510_v34, %v251_v7 }
  0x60   :  { %v256_v13 = vmul.f32 %v512_v35, %v252_v12  ;;  %v266_v52 = vadd.f32 %v252_v12, %v251_v7 }
  0x62   :  { %v260_v9 = vadd.f32 %v256_v13, %v255_v59 }
  0x64   :  { %261 = vadd.xlane.f32.xlu1 %v260_v9 }
  0x68   :  { %267 = vadd.xlane.f32.xlu1 %v266_v52 }
  0xb3   :  { %v98_v14 = vpop.xlane.xlu0 %97 }
  0xb4   :  { %v105_v16 = vsub.f32 256.0, %v98_v14  ;;  %v103_v19 = vmul.f32 0.00390625, %v98_v14 }
  0xb6   :  { %v107_v63 = vmul.f32 0.00390625, %v105_v16 }
  0xb8   :  { %v101_v10 = vpop.xlane.xlu0 %100 }
  0xb9   :  { %v106_v29 = vsub.f32 256.0, %v101_v10  ;;  %v104_v37 = vmul.f32 0.00390625, %v101_v10 }
  0xbb   :  { %v108_v32 = vmul.f32 0.00390625, %v106_v29 }
  0xe6   :  { %v265_v60 = vpop.xlane.xlu0 %264 }
  0xe8   :  { %v259_v6 = vpop.xlane.xlu1 %258 }
  0xe9   :  { %v269_v25 = vsub.f32 %v265_v60, %v259_v6  ;;  %v271_v0 = vmul.f32 %v259_v6, %v107_v63 }
  0xeb   :  { %v273_v2 = vmul.f32 %v269_v25, %v103_v19 }
  0xed   :  { %v275_v34 = vadd.f32 %v273_v2, %v271_v0  ;;  %v262_v30 = vpop.xlane.xlu1 %261 }
  0xee   :  { %v272_v40 = vmul.f32 %v262_v30, %v108_v32 }
  0xef   :  { %v280_v35 = vsel %vm279_vm12, %v275_v34, 0.0 }
  0xf0   :  { %282 = vst [vmem:[#allocation8] sm:$0xff] %v280_v35 }
  0xf1   :  { %v268_v33 = vpop.xlane.xlu1 %267 }
  0xf2   :  { %v270_v38 = vsub.f32 %v268_v33, %v262_v30 }
  0xf4   :  { %v274_v42 = vmul.f32 %v270_v38, %v104_v37 }
  0xf6   :  { %v276_v43 = vadd.f32 %v274_v42, %v272_v40 }
  0xf8   :  { %v281_v45 = vsel %vm279_vm12, %v276_v43, 0.0 }
  0xf9   :  { %283 = vst [vmem:[#allocation8 + $0x8] sm:$0xff] %v281_v45 }
  0xfa   :  { %418 = shalt.err (!%p415_p5)
}
  0xfb   :  { %s440_s29 = smov 128   ;;  %s441_s30 = smov 8  }
  0xfc   :  { %295 = dma.vmem_to_hbm [thread:$0]  %s290_s2, 256, %s672_s3, [#allocation4], %s440_s29, %s440_s29, %s441_s30  }
  0xfd   :  { %431 = dma.done.wait [#allocation4], 256  }
  0xfe   :  { %432 = vsyncadd [#allocation4], 4294967040 }
  0xff   :  { %299 = vsyncpa [#allocation3], 1 }
 0x100   :  { %300 = vsyncpa [#allocation6], 1 }
 0x101   :  { %301 = vsyncpa [#allocation4], 1 }

</bundles_post_ra>
